<compile_context>
chip_gen: v7x
topology: tpu7x:2x2x1
jax: 0.10.0
libtpu: 0.0.40
codegen_flags: <defaults>
</compile_context>

<pallas_src>
import functools
import math

import jax
import jax.numpy as jnp
from jax.experimental import pallas as pl
from jax.experimental.pallas import tpu as pltpu


# ----------------------------- Pallas kernel -------------------------------

def _fusion_kernel(gf_ref, lf_ref, w_ref, b_ref, out_ref, *,
                   G, L, has_align, offs):
    """Whole ModalFusionModule13 forward on one (TB, *) batch tile.

    w_ref: packed weight slab [rows, 128]; static row offsets in `offs`.
    b_ref: packed bias slab [8, 128]; row i = i-th bias vector (lane-padded).
    """
    TB = gf_ref.shape[0]
    H = G // 2

    gf = gf_ref[...]                                            # (TB, G)
    if has_align:
        wa = w_ref[offs["align"]:offs["align"] + L, :G]         # (L, G)
        ba = b_ref[0:1, :G]
        lf = jnp.dot(lf_ref[...], wa,
                     preferred_element_type=jnp.float32) + ba   # (TB, G)
    else:
        lf = lf_ref[...]                                        # (TB, G)

    # Lane-stacked streams: [global | local]
    xs = jnp.concatenate([gf, lf], axis=-1)                     # (TB, 2G)

    # --- AdaptiveFeatureSelection (both streams, block-diagonal weights) ---
    w1 = w_ref[offs["fc1"]:offs["fc1"] + 2 * G, :2 * H]         # (2G, 2H)
    b1 = b_ref[1:2, :2 * H]
    h = jnp.maximum(
        jnp.dot(xs, w1, preferred_element_type=jnp.float32) + b1, 0.0)

    w2 = w_ref[offs["fc2"]:offs["fc2"] + 2 * H, :2 * G]         # (2H, 2G)
    b2 = b_ref[2:3, :2 * G]
    logits = jnp.dot(h, w2, preferred_element_type=jnp.float32) + b2

    # Per-stream softmax over each half of the lane axis (masked reductions).
    lane = jax.lax.broadcasted_iota(jnp.int32, (TB, 2 * G), 1)
    is_g = lane < G
    neg = jnp.float32(-1e30)
    m_g = jnp.max(jnp.where(is_g, logits, neg), axis=-1, keepdims=True)
    m_l = jnp.max(jnp.where(is_g, neg, logits), axis=-1, keepdims=True)
    e = jnp.exp(logits - jnp.where(is_g, m_g, m_l))
    s_g = jnp.sum(jnp.where(is_g, e, 0.0), axis=-1, keepdims=True)
    s_l = jnp.sum(jnp.where(is_g, 0.0, e), axis=-1, keepdims=True)
    w = e * pl.reciprocal(jnp.where(is_g, s_g, s_l), approx=True)
    ws = w * xs                                                 # (TB, 2G)

    # --- Fused gamma|beta projection for both streams: one matmul ---
    # Output lane layout: [gamma_g | gamma_l | beta_g | beta_l]
    wgb = w_ref[offs["gb"]:offs["gb"] + 2 * G, :4 * G]          # (2G, 4G)
    bgb = b_ref[3:4, :4 * G]
    gb = jnp.dot(ws, wgb, preferred_element_type=jnp.float32) + bgb
    gamma = jax.nn.sigmoid(gb[:, :2 * G])
    beta = gb[:, 2 * G:]
    adj = (1.0 + gamma) * ws + beta      # == concat([adj_g, adj_l], -1)

    # --- Output projection: single matmul over the (already-concatenated)
    #     lane-stacked features ---
    wo = w_ref[offs["out"]:offs["out"] + 2 * G, :L + G]         # (2G, L+G)
    bo = b_ref[4:5, :L + G]
    out_ref[...] = jnp.dot(adj, wo, preferred_element_type=jnp.float32) + bo


# ------------------------------ Parameters ---------------------------------

def _init_linear(key, in_dim, out_dim):
    """Deterministic init mimicking nn.Linear default (uniform +-1/sqrt(in))."""
    k_w, k_b = jax.random.split(key)
    bound = 1.0 / math.sqrt(in_dim)
    w = jax.random.uniform(k_w, (out_dim, in_dim), jnp.float32, -bound, bound)
    b = jax.random.uniform(k_b, (out_dim,), jnp.float32, -bound, bound)
    return w, b


def make_params(key, global_dim, local_dim):
    keys = jax.random.split(key, 12)
    p = {}
    if global_dim != local_dim:
        p["align"] = _init_linear(keys[0], local_dim, global_dim)
    p["afs_g_fc1"] = _init_linear(keys[1], global_dim, global_dim // 2)
    p["afs_g_fc2"] = _init_linear(keys[2], global_dim // 2, global_dim)
    p["afs_l_fc1"] = _init_linear(keys[3], global_dim, global_dim // 2)
    p["afs_l_fc2"] = _init_linear(keys[4], global_dim // 2, global_dim)
    p["gamma_g"] = _init_linear(keys[5], global_dim, global_dim)
    p["beta_g"] = _init_linear(keys[6], global_dim, global_dim)
    p["gamma_l"] = _init_linear(keys[7], global_dim, global_dim)
    p["beta_l"] = _init_linear(keys[8], global_dim, global_dim)
    p["out"] = _init_linear(keys[9], 2 * global_dim, local_dim + global_dim)
    return p


# ------------------------------ Weight packing ------------------------------

def _pack_rows(mats, width):
    """Stack matrices along rows into one [sum_rows, width] slab.

    Each block's row count is padded up to a multiple of 8 so every block
    starts at a sublane-aligned offset. Returns (slab, row_offsets)."""
    blocks, offs, cur = [], [], 0
    for m in mats:
        r, c = m.shape
        r_pad = -(-r // 8) * 8
        blk = jnp.zeros((r_pad, width), jnp.float32).at[:r, :c].set(m)
        blocks.append(blk)
        offs.append(cur)
        cur += r_pad
    return jnp.concatenate(blocks, axis=0), offs


def _pack_bias(vecs, width):
    n_pad = -(-len(vecs) // 8) * 8
    out = jnp.zeros((n_pad, width), jnp.float32)
    for i, v in enumerate(vecs):
        out = out.at[i, :v.shape[0]].set(v)
    return out


# -------------------------------- Wrapper -----------------------------------

def modal_fusion_forward(global_features, local_features, params,
                         global_dim, local_dim):
    G, L = global_dim, local_dim
    H = G // 2
    B = global_features.shape[0]
    out_dim = L + G
    has_align = (G != L)

    def wT(name):
        return params[name][0].T          # [in, out]

    def bias(name):
        return params[name][1]

    # Block-diagonal AFS weights (top block = global stream, bottom = local).
    zGH = jnp.zeros((G, H), jnp.float32)
    w1bd = jnp.concatenate([
        jnp.concatenate([wT("afs_g_fc1"), zGH], axis=1),
        jnp.concatenate([zGH, wT("afs_l_fc1")], axis=1)], axis=0)   # (2G, 2H)
    zHG = jnp.zeros((H, G), jnp.float32)
    w2bd = jnp.concatenate([
        jnp.concatenate([wT("afs_g_fc2"), zHG], axis=1),
        jnp.concatenate([zHG, wT("afs_l_fc2")], axis=1)], axis=0)   # (2H, 2G)

    # Fused gamma|beta weight: output lanes [gamma_g | gamma_l | beta_g | beta_l]
    zGG = jnp.zeros((G, G), jnp.float32)
    wgb = jnp.concatenate([
        jnp.concatenate([wT("gamma_g"), zGG, wT("beta_g"), zGG], axis=1),
        jnp.concatenate([zGG, wT("gamma_l"), zGG, wT("beta_l")], axis=1)],
        axis=0)                                                     # (2G, 4G)

    wo = wT("out")                                                  # (2G, L+G)

    mats, names = [], []
    if has_align:
        mats.append(wT("align"))
        names.append("align")
    mats += [w1bd, w2bd, wgb, wo]
    names += ["fc1", "fc2", "gb", "out"]

    max_w = max(m.shape[1] for m in mats)
    width = -(-max_w // 128) * 128          # lane-pad slab to a 128 multiple
    w_packed, off_list = _pack_rows(mats, width)
    offs = dict(zip(names, off_list))

    ba = bias("align") if has_align else jnp.zeros((G,), jnp.float32)
    b1 = jnp.concatenate([bias("afs_g_fc1"), bias("afs_l_fc1")])
    b2 = jnp.concatenate([bias("afs_g_fc2"), bias("afs_l_fc2")])
    bgb = jnp.concatenate([bias("gamma_g"), bias("gamma_l"),
                           bias("beta_g"), bias("beta_l")])
    bo = bias("out")
    b_packed = _pack_bias([ba, b1, b2, bgb, bo], width)

    kernel = functools.partial(_fusion_kernel, G=G, L=L,
                               has_align=has_align, offs=offs)

    # Batch grid: TB rows per step; weights stay VMEM-resident.
    TB = B if B <= 512 else 512
    grid = (pl.cdiv(B, TB),)

    return pl.pallas_call(
        kernel,
        out_shape=jax.ShapeDtypeStruct((B, out_dim), jnp.float32),
        grid=grid,
        in_specs=[
            pl.BlockSpec((TB, G), lambda i: (i, 0)),
            pl.BlockSpec((TB, L), lambda i: (i, 0)),
            pl.BlockSpec(w_packed.shape, lambda i: (0, 0)),
            pl.BlockSpec(b_packed.shape, lambda i: (0, 0)),
        ],
        out_specs=pl.BlockSpec((TB, out_dim), lambda i: (i, 0)),
        compiler_params=pltpu.CompilerParams(
            dimension_semantics=("parallel",)),
    )(global_features, local_features, w_packed, b_packed)


# --------------------------- Pure-JAX reference -----------------------------

def _reference(global_features, local_features, params, global_dim, local_dim):
    def lin(x, name):
        w, b = params[name]
        return x @ w.T + b

    def afs(x, fc1, fc2):
        h = jax.nn.relu(lin(x, fc1))
        w = jax.nn.softmax(lin(h, fc2), axis=-1)
        return w * x

    lf = local_features
    if "align" in params:
        lf = lin(lf, "align")
    gf = afs(global_features, "afs_g_fc1", "afs_g_fc2")
    lf = afs(lf, "afs_l_fc1", "afs_l_fc2")
    gg = jax.nn.sigmoid(lin(gf, "gamma_g"))
    bg = lin(gf, "beta_g")
    gl = jax.nn.sigmoid(lin(lf, "gamma_l"))
    bl = lin(lf, "beta_l")
    adj_g = (1 + gg) * gf + bg
    adj_l = (1 + gl) * lf + bl
    comb = jnp.concatenate([adj_g, adj_l], axis=-1)
    return lin(comb, "out")


# ----------------------------------- Main ------------------------------------

if __name__ == "__main__":
    B, GLOBAL_DIM, LOCAL_DIM = 8, 32, 16

    key = jax.random.PRNGKey(0)
    k_g, k_l, k_p = jax.random.split(key, 3)
    global_features = jax.random.normal(k_g, (B, GLOBAL_DIM), jnp.float32)
    local_features = jax.random.normal(k_l, (B, LOCAL_DIM), jnp.float32)
    params = make_params(k_p, GLOBAL_DIM, LOCAL_DIM)

    out = modal_fusion_forward(global_features, local_features, params,
                               GLOBAL_DIM, LOCAL_DIM)
    out = jax.block_until_ready(out)

    ref = _reference(global_features, local_features, params,
                     GLOBAL_DIM, LOCAL_DIM)
    assert out.shape == (B, LOCAL_DIM + GLOBAL_DIM)
    # Tolerance covers the approximate EUP reciprocal in the softmax.
    assert jnp.allclose(out, ref, atol=1e-3, rtol=1e-3)

    print("KERNEL_OK")
</pallas_src>

<mosaic_0001>
module attributes {stable_mosaic.version = 11 : i64} {
  func.func @_fusion_kernel(%arg0: i32, %arg1: memref<8x32xf32, #tpu.memory_space<vmem>>, %arg2: memref<8x16xf32, #tpu.memory_space<vmem>>, %arg3: memref<240x128xf32, #tpu.memory_space<vmem>>, %arg4: memref<8x128xf32, #tpu.memory_space<vmem>>, %arg5: memref<8x48xf32, #tpu.memory_space<vmem>>) attributes {dimension_semantics = [#tpu.dimension_semantics<parallel>], iteration_bounds = array<i64: 1>, scalar_prefetch = 0 : i64, scratch_operands = 0 : i64, tpu.core_type = #tpu.core_type<tc>, window_params = [{transform_indices = @transform_0, window_bounds = array<i64: 8, 32>}, {transform_indices = @transform_1, window_bounds = array<i64: 8, 16>}, {pipeline_mode = #tpu.pipeline_mode<synchronous>, transform_indices = @transform_2, window_bounds = array<i64: 240, 128>}, {pipeline_mode = #tpu.pipeline_mode<synchronous>, transform_indices = @transform_3, window_bounds = array<i64: 8, 128>}, {transform_indices = @transform_4, window_bounds = array<i64: 8, 48>}]} {
    %c0 = arith.constant 0 : index
    %c0_0 = arith.constant 0 : index
    %0 = vector.load %arg1[%c0, %c0_0] : memref<8x32xf32, #tpu.memory_space<vmem>>, vector<8x32xf32>
    %c0_1 = arith.constant 0 : index
    %c0_2 = arith.constant 0 : index
    %1 = vector.load %arg3[%c0_1, %c0_2] : memref<240x128xf32, #tpu.memory_space<vmem>>, vector<16x32xf32>
    %c0_3 = arith.constant 0 : index
    %c0_4 = arith.constant 0 : index
    %2 = vector.load %arg4[%c0_3, %c0_4] : memref<8x128xf32, #tpu.memory_space<vmem>>, vector<1x32xf32>
    %c0_5 = arith.constant 0 : index
    %c0_6 = arith.constant 0 : index
    %3 = vector.load %arg2[%c0_5, %c0_6] : memref<8x16xf32, #tpu.memory_space<vmem>>, vector<8x16xf32>
    %cst = arith.constant dense<0.000000e+00> : vector<8x32xf32>
    %4 = tpu.matmul %3, %1, %cst {dimension_numbers = #tpu.dot_dimension_numbers<[1], [0], [0], [1], [0, 0, 1, 1], [], []>} : vector<8x16xf32>, vector<16x32xf32>, vector<8x32xf32> -> vector<8x32xf32>
    %5 = vector.broadcast %2 : vector<1x32xf32> to vector<8x32xf32>
    %6 = arith.addf %4, %5 : vector<8x32xf32>
    %7 = tpu.concatenate %0, %6 in 1 : vector<8x32xf32>, vector<8x32xf32> -> vector<8x64xf32>
    %c16 = arith.constant 16 : index
    %c0_7 = arith.constant 0 : index
    %8 = vector.load %arg3[%c16, %c0_7] : memref<240x128xf32, #tpu.memory_space<vmem>>, vector<64x32xf32>
    %c1 = arith.constant 1 : index
    %c0_8 = arith.constant 0 : index
    %9 = vector.load %arg4[%c1, %c0_8] : memref<8x128xf32, #tpu.memory_space<vmem>>, vector<1x32xf32>
    %cst_9 = arith.constant dense<0.000000e+00> : vector<8x32xf32>
    %10 = tpu.matmul %7, %8, %cst_9 {dimension_numbers = #tpu.dot_dimension_numbers<[1], [0], [0], [1], [0, 0, 1, 1], [], []>} : vector<8x64xf32>, vector<64x32xf32>, vector<8x32xf32> -> vector<8x32xf32>
    %11 = vector.broadcast %9 : vector<1x32xf32> to vector<8x32xf32>
    %12 = arith.addf %10, %11 : vector<8x32xf32>
    %cst_10 = arith.constant 0.000000e+00 : f32
    %13 = vector.broadcast %cst_10 : f32 to vector<8x32xf32>
    %14 = arith.maximumf %12, %13 : vector<8x32xf32>
    %c80 = arith.constant 80 : index
    %c0_11 = arith.constant 0 : index
    %15 = vector.load %arg3[%c80, %c0_11] : memref<240x128xf32, #tpu.memory_space<vmem>>, vector<32x64xf32>
    %c2 = arith.constant 2 : index
    %c0_12 = arith.constant 0 : index
    %16 = vector.load %arg4[%c2, %c0_12] : memref<8x128xf32, #tpu.memory_space<vmem>>, vector<1x64xf32>
    %cst_13 = arith.constant dense<0.000000e+00> : vector<8x64xf32>
    %17 = tpu.matmul %14, %15, %cst_13 {dimension_numbers = #tpu.dot_dimension_numbers<[1], [0], [0], [1], [0, 0, 1, 1], [], []>} : vector<8x32xf32>, vector<32x64xf32>, vector<8x64xf32> -> vector<8x64xf32>
    %18 = vector.broadcast %16 : vector<1x64xf32> to vector<8x64xf32>
    %19 = arith.addf %17, %18 : vector<8x64xf32>
    %20 = tpu.iota {dimensions = array<i32: 1>} : vector<8x64xi32>
    %c32_i32 = arith.constant 32 : i32
    %21 = vector.broadcast %c32_i32 : i32 to vector<8x64xi32>
    %22 = arith.cmpi slt, %20, %21 : vector<8x64xi32>
    %cst_14 = arith.constant -1.000000e+30 : f32
    %23 = vector.broadcast %cst_14 : f32 to vector<8x64xf32>
    %24 = arith.select %22, %19, %23 : vector<8x64xi1>, vector<8x64xf32>
    %cst_15 = arith.constant dense<0xFF800000> : vector<8xf32>
    %25 = vector.multi_reduction <maximumf>, %24, %cst_15 [1] : vector<8x64xf32> to vector<8xf32>
    %26 = vector.shape_cast %25 : vector<8xf32> to vector<8x1xf32>
    %cst_16 = arith.constant -1.000000e+30 : f32
    %27 = vector.broadcast %cst_16 : f32 to vector<8x64xf32>
    %28 = arith.select %22, %27, %19 : vector<8x64xi1>, vector<8x64xf32>
    %cst_17 = arith.constant dense<0xFF800000> : vector<8xf32>
    %29 = vector.multi_reduction <maximumf>, %28, %cst_17 [1] : vector<8x64xf32> to vector<8xf32>
    %30 = vector.shape_cast %29 : vector<8xf32> to vector<8x1xf32>
    %31 = vector.shape_cast %26 : vector<8x1xf32> to vector<8x1xf32>
    %32 = vector.broadcast %31 : vector<8x1xf32> to vector<8x64xf32>
    %33 = vector.shape_cast %30 : vector<8x1xf32> to vector<8x1xf32>
    %34 = vector.broadcast %33 : vector<8x1xf32> to vector<8x64xf32>
    %35 = arith.select %22, %32, %34 : vector<8x64xi1>, vector<8x64xf32>
    %36 = arith.subf %19, %35 : vector<8x64xf32>
    %37 = math.exp %36 : vector<8x64xf32>
    %cst_18 = arith.constant 0.000000e+00 : f32
    %38 = vector.broadcast %cst_18 : f32 to vector<8x64xf32>
    %39 = arith.select %22, %37, %38 : vector<8x64xi1>, vector<8x64xf32>
    %cst_19 = arith.constant dense<0.000000e+00> : vector<8xf32>
    %40 = vector.multi_reduction <add>, %39, %cst_19 [1] : vector<8x64xf32> to vector<8xf32>
    %41 = vector.shape_cast %40 : vector<8xf32> to vector<8x1xf32>
    %cst_20 = arith.constant 0.000000e+00 : f32
    %42 = vector.broadcast %cst_20 : f32 to vector<8x64xf32>
    %43 = arith.select %22, %42, %37 : vector<8x64xi1>, vector<8x64xf32>
    %cst_21 = arith.constant dense<0.000000e+00> : vector<8xf32>
    %44 = vector.multi_reduction <add>, %43, %cst_21 [1] : vector<8x64xf32> to vector<8xf32>
    %45 = vector.shape_cast %44 : vector<8xf32> to vector<8x1xf32>
    %46 = vector.shape_cast %41 : vector<8x1xf32> to vector<8x1xf32>
    %47 = vector.broadcast %46 : vector<8x1xf32> to vector<8x64xf32>
    %48 = vector.shape_cast %45 : vector<8x1xf32> to vector<8x1xf32>
    %49 = vector.broadcast %48 : vector<8x1xf32> to vector<8x64xf32>
    %50 = arith.select %22, %47, %49 : vector<8x64xi1>, vector<8x64xf32>
    %51 = tpu.reciprocal %50 {approx = true} : vector<8x64xf32> -> vector<8x64xf32>
    %52 = arith.mulf %37, %51 : vector<8x64xf32>
    %53 = arith.mulf %52, %7 : vector<8x64xf32>
    %c112 = arith.constant 112 : index
    %c0_22 = arith.constant 0 : index
    %54 = vector.load %arg3[%c112, %c0_22] : memref<240x128xf32, #tpu.memory_space<vmem>>, vector<64x128xf32>
    %c3 = arith.constant 3 : index
    %c0_23 = arith.constant 0 : index
    %55 = vector.load %arg4[%c3, %c0_23] : memref<8x128xf32, #tpu.memory_space<vmem>>, vector<1x128xf32>
    %cst_24 = arith.constant dense<0.000000e+00> : vector<8x128xf32>
    %56 = tpu.matmul %53, %54, %cst_24 {dimension_numbers = #tpu.dot_dimension_numbers<[1], [0], [0], [1], [0, 0, 1, 1], [], []>} : vector<8x64xf32>, vector<64x128xf32>, vector<8x128xf32> -> vector<8x128xf32>
    %57 = vector.broadcast %55 : vector<1x128xf32> to vector<8x128xf32>
    %58 = arith.addf %56, %57 : vector<8x128xf32>
    %59 = vector.extract_strided_slice %58 {offsets = [0, 0], sizes = [8, 64], strides = [1, 1]} : vector<8x128xf32> to vector<8x64xf32>
    %60 = arith.negf %59 : vector<8x64xf32>
    %61 = math.exp %60 : vector<8x64xf32>
    %cst_25 = arith.constant 1.000000e+00 : f32
    %62 = vector.broadcast %cst_25 : f32 to vector<8x64xf32>
    %63 = arith.addf %62, %61 : vector<8x64xf32>
    %64 = arith.divf %62, %63 : vector<8x64xf32>
    %65 = vector.extract_strided_slice %58 {offsets = [0, 64], sizes = [8, 64], strides = [1, 1]} : vector<8x128xf32> to vector<8x64xf32>
    %cst_26 = arith.constant 1.000000e+00 : f32
    %66 = vector.broadcast %cst_26 : f32 to vector<8x64xf32>
    %67 = arith.addf %66, %64 : vector<8x64xf32>
    %68 = arith.mulf %67, %53 : vector<8x64xf32>
    %69 = arith.addf %68, %65 : vector<8x64xf32>
    %c176 = arith.constant 176 : index
    %c0_27 = arith.constant 0 : index
    %70 = vector.load %arg3[%c176, %c0_27] : memref<240x128xf32, #tpu.memory_space<vmem>>, vector<64x48xf32>
    %c4 = arith.constant 4 : index
    %c0_28 = arith.constant 0 : index
    %71 = vector.load %arg4[%c4, %c0_28] : memref<8x128xf32, #tpu.memory_space<vmem>>, vector<1x48xf32>
    %cst_29 = arith.constant dense<0.000000e+00> : vector<8x48xf32>
    %72 = tpu.matmul %69, %70, %cst_29 {dimension_numbers = #tpu.dot_dimension_numbers<[1], [0], [0], [1], [0, 0, 1, 1], [], []>} : vector<8x64xf32>, vector<64x48xf32>, vector<8x48xf32> -> vector<8x48xf32>
    %73 = vector.broadcast %71 : vector<1x48xf32> to vector<8x48xf32>
    %74 = arith.addf %72, %73 : vector<8x48xf32>
    %c0_30 = arith.constant 0 : index
    %c0_31 = arith.constant 0 : index
    %75 = vector.load %arg5[%c0_30, %c0_31] : memref<8x48xf32, #tpu.memory_space<vmem>>, vector<8x48xf32>
    tpu.vector_store %arg5[%c0_30, %c0_31], %74 {strides = array<i32>} : memref<8x48xf32, #tpu.memory_space<vmem>>, vector<8x48xf32>,
    return
  }
  func.func @transform_0(%arg0: i32) -> (i32, i32) {
    %c0_i32 = arith.constant 0 : i32
    %c0_i32_0 = arith.constant 0 : i32
    return %arg0, %c0_i32 : i32, i32
  }
  func.func @transform_1(%arg0: i32) -> (i32, i32) {
    %c0_i32 = arith.constant 0 : i32
    %c0_i32_0 = arith.constant 0 : i32
    return %arg0, %c0_i32 : i32, i32
  }
  func.func @transform_2(%arg0: i32) -> (i32, i32) {
    %c0_i32 = arith.constant 0 : i32
    %c0_i32_0 = arith.constant 0 : i32
    %c0_i32_1 = arith.constant 0 : i32
    return %c0_i32, %c0_i32_0 : i32, i32
  }
  func.func @transform_3(%arg0: i32) -> (i32, i32) {
    %c0_i32 = arith.constant 0 : i32
    %c0_i32_0 = arith.constant 0 : i32
    %c0_i32_1 = arith.constant 0 : i32
    return %c0_i32, %c0_i32_0 : i32, i32
  }
  func.func @transform_4(%arg0: i32) -> (i32, i32) {
    %c0_i32 = arith.constant 0 : i32
    %c0_i32_0 = arith.constant 0 : i32
    return %arg0, %c0_i32 : i32, i32
  }
}

</mosaic_0001>

<bundles_post_ra>
// kernel: tpu_custom_call.1
= control target key start
LH: loop header
LB: loop body
LE: loop exit
PB: predicated region body
PF: predicated region fallthrough
CT: control target
= control target key end

     0   :  { %9 = vsyncpa [#allocation3], 0  ;;  %s961_s0 = inlined_call_operand.hbm [shape: f32[8,32], index: 0, kind: input, shape index: {}]   ;;  %s962_s1 = inlined_call_operand.hbm [shape: f32[8,16], index: 1, kind: input, shape index: {}]   ;;  %s963_s2 = inlined_call_operand.hbm [shape: f32[240,128], index: 2, kind: input, shape index: {}]   ;;  %s964_s3 = inlined_call_operand.vmem [shape: f32[8,128], index: 3, kind: input, shape index: {}]   ;;  %s965_s4 = inlined_call_operand.hbm [shape: f32[8,48], index: 4, kind: output, shape index: {}]  }
   0x1   :  { %10 = vsyncpa [#allocation6], 0 }
   0x2   :  { %11 = vsyncpa [#allocation4], 0  ;;  %s823_s15 = smov [#allocation5]   ;;  %s824_s17 = smov [#allocation2]  }
   0x3   :  { %s28_s16 = sshll.u32 %s823_s15, 4  ;;  %s18_s18 = sshll.u32 %s824_s17, 4  ;;  %s29_s16 = int_to_ptr.vmem [resolvable:$true] %s28_s16  ;;  %s19_s18 = int_to_ptr.vmem [resolvable:$true] %s18_s18 }
   0x4   :  { %s729_s21 = scalar_lea.hbm %s962_s1, 128 }
   0x5   :  { %p730_p0 = scmp.ne.s32.totalorder %s962_s1, %s729_s21  ;;  %p733_p1 = scmp.lt.u32.totalorder %s729_s21, %s962_s1 }
   0x7   :  { %p735_p2 = pnand %p733_p1, %p730_p0 }
   0x9   :  { %738 = shalt.err (!%p735_p2)
}
   0xa   :  { %s739_s26 = scalar_lea.vmem %s29_s16, 128  ;;  %p744_p4 = scmp.lt.s32.totalorder %s29_s16, %s29_s16 }
   0xb   :  { %p740_p3 = scmp.ne.s32.totalorder %s29_s16, %s739_s26  ;;  %p745_p5 = scmp.lt.s32.totalorder %s739_s26, %s739_s26 }
   0xd   :  { %p746_p6 = por %p745_p5, %p744_p4 }
   0xf   :  { %p747_p7 = pnand %p746_p6, %p740_p3 }
  0x11   :  { %750 = shalt.err (!%p747_p7)
}
  0x12   :  { %31 = dma.hbm_to_vmem [thread:$0]  %s962_s1, 128, %s29_s16, [#allocation6]  }
  0x13   :  { %s751_s5 = scalar_lea.hbm %s961_s0, 128 }
  0x14   :  { %p752_p8 = scmp.ne.s32.totalorder %s961_s0, %s751_s5  ;;  %p755_p9 = scmp.lt.u32.totalorder %s751_s5, %s961_s0 }
  0x16   :  { %p757_p10 = pnand %p755_p9, %p752_p8 }
  0x18   :  { %760 = shalt.err (!%p757_p10)
}
  0x19   :  { %s761_s10 = scalar_lea.vmem %s19_s18, 128  ;;  %p766_p12 = scmp.lt.s32.totalorder %s19_s18, %s19_s18 }
  0x1a   :  { %p762_p11 = scmp.ne.s32.totalorder %s19_s18, %s761_s10  ;;  %p767_p13 = scmp.lt.s32.totalorder %s761_s10, %s761_s10 }
  0x1c   :  { %p768_p0 = por %p767_p13, %p766_p12 }
  0x1e   :  { %p769_p1 = pnand %p768_p0, %p762_p11 }
  0x20   :  { %772 = shalt.err (!%p769_p1)
}
  0x21   :  { %21 = dma.hbm_to_vmem [thread:$0]  %s961_s0, 128, %s19_s18, [#allocation3]  }
  0x22   :  { %s825_s12 = smov [#allocation7]   ;;  %s773_s16 = scalar_lea.hbm %s963_s2, 3840 }
  0x23   :  { %s37_s13 = sshll.u32 %s825_s12, 4  ;;  %p774_p2 = scmp.ne.s32.totalorder %s963_s2, %s773_s16  ;;  %s38_s13 = int_to_ptr.vmem [resolvable:$true] %s37_s13 }
  0x24   :  { %p777_p3 = scmp.lt.u32.totalorder %s773_s16, %s963_s2 }
  0x26   :  { %p779_p4 = pnand %p777_p3, %p774_p2 }
  0x28   :  { %782 = shalt.err (!%p779_p4)
}
  0x29   :  { %s783_s22 = scalar_lea.vmem %s38_s13, 3840  ;;  %p788_p6 = scmp.lt.s32.totalorder %s38_s13, %s38_s13 }
  0x2a   :  { %p784_p5 = scmp.ne.s32.totalorder %s38_s13, %s783_s22  ;;  %p789_p7 = scmp.lt.s32.totalorder %s783_s22, %s783_s22 }
  0x2c   :  { %p790_p8 = por %p789_p7, %p788_p6 }
  0x2e   :  { %p791_p9 = pnand %p790_p8, %p784_p5 }
  0x30   :  { %794 = shalt.err (!%p791_p9)
}
  0x31   :  { %s826_s0 = smov 128   ;;  %s827_s18 = smov 8  }
  0x32   :  { %43 = dma.hbm_to_vmem [thread:$0]  %s963_s2, 3840, %s38_s13, [#allocation6], %s826_s0, %s826_s0, %s827_s18  }
  0x33   :  { %817 = dma.done.wait [#allocation3], 128  }
  0x34   :  { %818 = vsyncadd [#allocation3], 4294967168 }
  0x35   :  { %819 = dma.done.wait [#allocation6], 3968  }
  0x36   :  { %820 = vsyncadd [#allocation6], 4294963328  ;;  %v828_v0 = vmov 0.0|0.0   ;;  %vm829_vm0 = vmmov 0   ;;  %v830_v1 = vmov 0.0   ;;  %v56_v2 = vld [vmem:[#allocation7] sm:$0xff]  ;;  %v314_v36 = vlaneseq }
  0x37   :  { %665 = vmatprep.subr.bf16.mxu0 %v828_v0  ;;  %594 = vmatprep.mubr.msk.f32.mxu0 %vm829_vm0, %v830_v1  ;;  %v57_v3 = vld [vmem:[#allocation7 + $0x8] sm:$0xff]  ;;  %v59_v5 = vld [vmem:[#allocation5] sm:$0xff]  ;;  %vm64_vm1 = vcmask 130048   ;;  %v144_v6 = vld [vmem:[#allocation7 + $0x10] sm:$0xff]  ;;  %s831_s26 = smov 32   ;;  %vm142_vm2 = vcmask 261120  }
  0x38   :  { %668 = vmatprep.subr.bf16.mxu1 %v828_v0  ;;  %613 = vmatprep.mubr.msk.f32.mxu1 %vm829_vm0, %v830_v1  ;;  %v666_v4 = vpack.c.bf16 %v57_v3, %v56_v2  ;;  %v145_v7 = vld [vmem:[#allocation7 + $0x18] sm:$0xff]  ;;  %v146_v8 = vld [vmem:[#allocation7 + $0x20] sm:$0xff]  ;;  %v147_v10 = vld [vmem:[#allocation7 + $0x28] sm:$0xff]  ;;  %vm157_vm3 = vcmask 523264   ;;  %v315_v37 = vand.u32 127, %v314_v36  ;;  %s832_s7 = smov 64  }
  0x39   :  { %v669_v9 = vpack.c.bf16 %v145_v7, %v144_v6  ;;  %v672_v11 = vpack.c.bf16 %v147_v10, %v146_v8  ;;  %v148_v12 = vld [vmem:[#allocation7 + $0x30] sm:$0xff]  ;;  %v149_v13 = vld [vmem:[#allocation7 + $0x38] sm:$0xff]  ;;  %v150_v15 = vld [vmem:[#allocation7 + $0x40] sm:$0xff]  ;;  %s833_s10 = smov [#allocation8]   ;;  %vm526_vm5 = vcmask 392192  }
  0x3a   :  { %667 = vmatpush3.bf16.msra.mxu0 %v666_v4  ;;  %v675_v14 = vpack.c.bf16 %v149_v13, %v148_v12  ;;  %v151_v16 = vld [vmem:[#allocation7 + $0x48] sm:$0xff]  ;;  %v232_v18 = vld [vmem:[#allocation7 + $0x50] sm:$0xff]  ;;  %v233_v19 = vld [vmem:[#allocation7 + $0x58] sm:$0xff]  ;;  %vm316_vm4 = vcmp.lt.s32.totalorder %v315_v37, 32  ;;  %s534_s1 = sshll.u32 %s833_s10, 4  ;;  %s535_s1 = int_to_ptr.vmem [resolvable:$true] %s534_s1 }
  0x3b   :  { %680 = vmatprep.subr.bf16.mxu0 %v828_v0  ;;  %670 = vmatpush3.bf16.msra.mxu1 %v669_v9  ;;  %v678_v17 = vpack.c.bf16 %v151_v16, %v150_v15  ;;  %v681_v20 = vpack.c.bf16 %v233_v19, %v232_v18  ;;  %v544_v21 = vld [vmem:[%s964_s3] ss:$0 sm:$0xff]  ;;  %v234_v28 = vld [vmem:[#allocation7 + $0x60] sm:$0xff]  ;;  %v235_v29 = vld [vmem:[#allocation7 + $0x68] sm:$0xff]  ;;  %s795_s11 = scalar_lea.vmem %s535_s1, 128  ;;  %p800_p11 = scmp.lt.s32.totalorder %s535_s1, %s535_s1 }
  0x3c   :  { %671 = vmatprep.subr.bf16.mxu1 %v828_v0  ;;  %v55_v25 = vld [vmem:[#allocation2] sm:$0xff]  ;;  %v684_v30 = vpack.c.bf16 %v235_v29, %v234_v28  ;;  %v342_v57 = vld [vmem:[#allocation7 + $0x78] sm:$0xff]  ;;  %v343_v59 = vld [vmem:[#allocation7 + $0x80] sm:$0xff]  ;;  %p796_p10 = scmp.ne.s32.totalorder %s535_s1, %s795_s11  ;;  %p801_p12 = scmp.lt.s32.totalorder %s795_s11, %s795_s11 }
  0x3d   :  { %595 = vmatmul.mubr.msk.f32.vlgmr.msra.gmra.mrb[0].mxu0 %vm64_vm1, %v59_v5  ;;  %v546_v31 = vld [vmem:[%s964_s3 + $0x1] ss:$0 sm:$0xff]  ;;  %v548_v38 = vld [vmem:[%s964_s3 + $0x2] ss:$0 sm:$0xff]  ;;  %v344_v60 = vld [vmem:[#allocation7 + $0x88] sm:$0xff] }
  0x3e   :  { %624 = vmatprep.mubr.msk.f32.mxu0 %vm829_vm0, %v830_v1  ;;  %682 = vmatpush3.bf16.msra.mxu0 %v681_v20  ;;  %v341_v56 = vld [vmem:[#allocation7 + $0x70] sm:$0xff]  ;;  %v690_v61 = vpack.c.bf16 %v344_v60, %v343_v59  ;;  %v346_v63 = vld [vmem:[#allocation7 + $0x98] sm:$0xff]  ;;  %v347_v2 = vld [vmem:[#allocation7 + $0xa0] sm:$0xff]  ;;  %p802_p13 = por %p801_p12, %p800_p11 }
  0x3f   :  { %673 = vmatpush3.bf16.msra.mxu1 %v672_v11  ;;  %683 = vmatprep.subr.bf16.mxu0 %v828_v0  ;;  %v687_v58 = vpack.c.bf16 %v342_v57, %v341_v56  ;;  %v345_v62 = vld [vmem:[#allocation7 + $0x90] sm:$0xff]  ;;  %v348_v3 = vld [vmem:[#allocation7 + $0xa8] sm:$0xff]  ;;  %v441_v12 = vld [vmem:[#allocation7 + $0xb8] sm:$0xff] }
  0x40   :  { %674 = vmatprep.subr.bf16.mxu1 %v828_v0  ;;  %v696_v4 = vpack.c.bf16 %v348_v3, %v347_v2  ;;  %v440_v11 = vld [vmem:[#allocation7 + $0xb0] sm:$0xff]  ;;  %v442_v13 = vld [vmem:[#allocation7 + $0xc0] sm:$0xff]  ;;  %v443_v15 = vld [vmem:[#allocation7 + $0xc8] sm:$0xff]  ;;  %p803_p0 = pnand %p802_p13, %p796_p10 }
  0x41   :  { %v702_v16 = vpack.c.bf16 %v443_v15, %v442_v13  ;;  %v445_v18 = vld [vmem:[#allocation7 + $0xd8] sm:$0xff]  ;;  %v446_v20 = vld [vmem:[#allocation7 + $0xe0] sm:$0xff] }
  0x42   :  { %685 = vmatpush3.bf16.msra.mxu0 %v684_v30 }
  0x43   :  { %676 = vmatpush3.bf16.msra.mxu1 %v675_v14  ;;  %686 = vmatprep.subr.bf16.mxu0 %v828_v0  ;;  %v699_v14 = vpack.c.bf16 %v441_v12, %v440_v11 }
  0x44   :  { %677 = vmatprep.subr.bf16.mxu1 %v828_v0 }
  0x47   :  { %679 = vmatpush3.bf16.msra.mxu1 %v678_v17  ;;  %v444_v17 = vld [vmem:[#allocation7 + $0xd0] sm:$0xff] }
  0x48   :  { %698 = vmatprep.subr.bf16.mxu1 %v828_v0  ;;  %v705_v19 = vpack.c.bf16 %v445_v18, %v444_v17 }
 0x110   :  { %v134_v22 = vpop.f32.mrb[0].mxu0 }
 0x111   :  { %v135_v23 = vadd.f32 %v544_v21, %v134_v22  ;;  %v596_v24 = vpop.f32.mrb[1].mxu0  ;;  %v447_v21 = vld [vmem:[#allocation7 + $0xe8] sm:$0xff] }
 0x112   :  { %v708_v22 = vpack.c.bf16 %v447_v21, %v446_v20 }
 0x113   :  { %139 = vrot.lane.b32.xlu0 %v135_v23, %s831_s26  ;;  %v550_v23 = vld [vmem:[%s964_s3 + $0x3] ss:$0 sm:$0xff] }
 0x185   :  { %v140_v26 = vpop.permute.xlu0 %139 }
 0x186   :  { %v910_v27 = vsel %vm142_vm2, %v55_v25, %v140_v26 }
 0x187   :  { %614 = vmatmul.mubr.msk.f32.vlgmr.msra.gmra.mrb[0].mxu1 %vm157_vm3, %v910_v27 }
 0x188   :  { %662 = vmatprep.mubr.msk.f32.mxu1 %vm829_vm0, %v830_v1  ;;  %700 = vmatpush3.bf16.msra.mxu1 %v699_v14 }
 0x189   :  { %701 = vmatprep.subr.bf16.mxu1 %v828_v0 }
 0x18c   :  { %703 = vmatpush3.bf16.msra.mxu1 %v702_v16 }
 0x18d   :  { %704 = vmatprep.subr.bf16.mxu1 %v828_v0 }
 0x190   :  { %706 = vmatpush3.bf16.msra.mxu1 %v705_v19 }
 0x191   :  { %707 = vmatprep.subr.bf16.mxu1 %v828_v0 }
 0x194   :  { %709 = vmatpush3.bf16.msra.mxu1 %v708_v22 }
 0x25a   :  { %v227_v32 = vpop.f32.mrb[0].mxu1 }
 0x25b   :  { %v228_v33 = vadd.f32 %v546_v31, %v227_v32  ;;  %v615_v34 = vpop.f32.mrb[1].mxu1 }
 0x25c   :  { %v553_v34 = vld [vmem:[%s964_s3 + $0x4] ss:$0 sm:$0xff] }
 0x25d   :  { %v231_v35 = vmax.f32 %v228_v33, 0.0 }
 0x25f   :  { %625 = vmatmul.mubr.msk.f32.vlgmr.msra.gmra.mrb[2].mxu0 %vm142_vm2, %v231_v35 }
 0x260   :  { %643 = vmatprep.mubr.msk.f32.mxu0 %vm829_vm0, %v830_v1  ;;  %688 = vmatpush3.bf16.msra.mxu0 %v687_v58  ;;  %v693_v1 = vpack.c.bf16 %v346_v63, %v345_v62 }
 0x261   :  { %689 = vmatprep.subr.bf16.mxu0 %v828_v0 }
 0x264   :  { %691 = vmatpush3.bf16.msra.mxu0 %v690_v61 }
 0x265   :  { %692 = vmatprep.subr.bf16.mxu0 %v828_v0 }
 0x268   :  { %694 = vmatpush3.bf16.msra.mxu0 %v693_v1 }
 0x269   :  { %695 = vmatprep.subr.bf16.mxu0 %v828_v0 }
 0x26c   :  { %697 = vmatpush3.bf16.msra.mxu0 %v696_v4 }
 0x332   :  { %v310_v39 = vpop.f32.mrb[2].mxu0 }
 0x333   :  { %v311_v40 = vadd.f32 %v548_v38, %v310_v39  ;;  %v626_v41 = vpop.f32.mrb[3].mxu0 }
 0x335   :  { %v321_v42 = vsel %vm316_vm4, -1e+30, %v311_v40  ;;  %v317_v43 = vsel %vm316_vm4, %v311_v40, -1e+30 }
 0x336   :  { %v322_v44 = vsel %vm157_vm3, %v321_v42, -inf  ;;  %v318_v45 = vsel %vm157_vm3, %v317_v43, -inf }
 0x337   :  { %323 = vmax.xlane.f32.xlu1 %v322_v44  ;;  %319 = vmax.xlane.f32.xlu0 %v318_v45 }
 0x3c4   :  { %v324_v46 = vpop.xlane.xlu1 %323  ;;  %v320_v47 = vpop.xlane.xlu0 %319 }
 0x3c5   :  { %v325_v48 = vsel %vm316_vm4, %v320_v47, %v324_v46 }
 0x3c6   :  { %v326_v49 = vsub.f32 %v311_v40, %v325_v48 }
 0x3c8   :  { %v327_v50 = vmul.f32 1.442695, %v326_v49 }
 0x3ca   :  { %721 = vpow2.f32 %v327_v50 }
 0x3d4   :  { %v722_v51 = vpop.eup %721 }
 0x3d5   :  { %v329_v52 = vsel %vm316_vm4, %v722_v51, 0.0  ;;  %v333_v54 = vsel %vm316_vm4, 0.0, %v722_v51 }
 0x3d6   :  { %v330_v53 = vsel %vm157_vm3, %v329_v52, 0.0  ;;  %v334_v55 = vsel %vm157_vm3, %v333_v54, 0.0 }
 0x3d7   :  { %331 = vadd.xlane.f32.xlu1 %v330_v53 }
 0x3db   :  { %335 = vadd.xlane.f32.xlu1 %v334_v55 }
 0x464   :  { %v332_v5 = vpop.xlane.xlu1 %331 }
 0x468   :  { %v336_v6 = vpop.xlane.xlu1 %335 }
 0x469   :  { %v337_v7 = vsel %vm316_vm4, %v332_v5, %v336_v6 }
 0x46a   :  { %723 = vrcp.f32 %v337_v7 }
 0x474   :  { %v724_v8 = vpop.eup %723 }
 0x475   :  { %v339_v9 = vmul.f32 %v724_v8, %v722_v51 }
 0x477   :  { %v340_v10 = vmul.f32 %v339_v9, %v910_v27 }
 0x479   :  { %644 = vmatmul.mubr.msk.f32.vlgmr.msra.gmra.mrb[4].mxu0 %vm157_vm3, %v340_v10 }
 0x54c   :  { %v423_v24 = vpop.f32.mrb[4].mxu0 }
 0x54d   :  { %v424_v25 = vadd.f32 %v550_v23, %v423_v24  ;;  %v645_v26 = vpop.f32.mrb[5].mxu0 }
 0x54f   :  { %436 = vrot.lane.b32.xlu1 %v424_v25, %s832_s7  ;;  %v552_v27 = vmul.f32 -1.442695, %v424_v25 }
 0x551   :  { %725 = vpow2.f32 %v552_v27 }
 0x55b   :  { %v726_v28 = vpop.eup %725 }
 0x55c   :  { %v430_v29 = vadd.f32 1.0, %v726_v28 }
 0x55e   :  { %727 = vrcp.f32 %v430_v29 }
 0x568   :  { %v728_v30 = vpop.eup %727 }
 0x569   :  { %v433_v31 = vadd.f32 1.0, %v728_v30 }
 0x56b   :  { %v434_v32 = vmul.f32 %v433_v31, %v340_v10 }
 0x5c1   :  { %v437_v33 = vpop.permute.xlu1 %436 }
 0x5c2   :  { %v439_v0 = vadd.f32 %v437_v33, %v434_v32 }
 0x5c4   :  { %663 = vmatmul.mubr.msk.f32.vlgmr.msra.gmra.mrb[2].mxu1 %vm157_vm3, %v439_v0 }
 0x697   :  { %v522_v35 = vpop.f32.mrb[2].mxu1 }
 0x698   :  { %v523_v36 = vadd.f32 %v553_v34, %v522_v35  ;;  %v664_v37 = vpop.f32.mrb[3].mxu1 }
 0x69a   :  { %527 = vst.msk [vmem:[#allocation8] sm:$0xff] %vm526_vm5, %v523_v36 }
 0x69b   :  { %806 = shalt.err (!%p803_p0)
}
 0x69c   :  { %s807_s14 = scalar_lea.hbm %s965_s4, 128 }
 0x69d   :  { %p808_p1 = scmp.ne.s32.totalorder %s965_s4, %s807_s14  ;;  %p811_p2 = scmp.lt.u32.totalorder %s807_s14, %s965_s4 }
 0x69f   :  { %p813_p3 = pnand %p811_p2, %p808_p1 }
 0x6a1   :  { %816 = shalt.err (!%p813_p3)
}
 0x6a2   :  { %537 = dma.vmem_to_hbm [thread:$0]  %s535_s1, 128, %s965_s4, [#allocation4]  }
 0x6a3   :  { %821 = dma.done.wait [#allocation4], 128  }
 0x6a4   :  { %822 = vsyncadd [#allocation4], 4294967168 }
 0x6a5   :  { %541 = vsyncpa [#allocation3], 1 }
 0x6a6   :  { %542 = vsyncpa [#allocation6], 1 }
 0x6a7   :  { %543 = vsyncpa [#allocation4], 1 }

</bundles_post_ra>
